<compile_context>
chip_gen: v7x
topology: tpu7x:2x2x1
jax: 0.10.0
libtpu: 0.0.40
codegen_flags: <defaults>
</compile_context>

<pallas_src>
import functools
import numpy as np
import jax
import jax.numpy as jnp
from jax.experimental import pallas as pl
from jax.experimental.pallas import tpu as pltpu


def _bilinear_matrix(out_size: int, in_size: int) -> np.ndarray:
    """Row-stochastic (out_size, in_size) matrix reproducing
    F.interpolate(mode='bilinear', align_corners=False) along one axis."""
    m = np.zeros((out_size, in_size), dtype=np.float32)
    scale = in_size / out_size
    for i in range(out_size):
        src = (i + 0.5) * scale - 0.5
        if src < 0.0:
            src = 0.0
        i0 = min(int(np.floor(src)), in_size - 1)
        i1 = min(i0 + 1, in_size - 1)
        frac = src - i0
        m[i, i0] += 1.0 - frac
        m[i, i1] += frac
    return m


def _segdecoder_kernel(a_ref, x_ref, wxt_ref, b_ref, o_ref):
    # a_ref   : (K*toh, Cin*H)  folded (conv_w x Wy) rows for this OH tile
    # x_ref   : (1, Cin*H, W)   input features for this batch element
    # wxt_ref : (W, OW)         width-interp matrix, pre-transposed
    # b_ref   : (K*toh, 1)      conv bias column (f32)
    # o_ref   : (1, K, toh, OW) output tile (NCHW, OW lane-dense)
    _, K, toh, OW = o_ref.shape

    # Fused 1x1-conv + height interpolation: one MXU matmul, contraction Cin*H.
    t = jnp.dot(a_ref[...], x_ref[0], preferred_element_type=jnp.float32)  # (K*toh, W)
    # Width interpolation: second MXU matmul; result lane-dense along OW.
    t = t.astype(wxt_ref.dtype)  # no-op in f32; keeps the bf16 MXU path bf16
    out = jnp.dot(t, wxt_ref[...], preferred_element_type=jnp.float32)     # (K*toh, OW)
    # Bias (row-stochastic resize => identical to bias-before-resize).
    out = out + b_ref[...]

    if toh % 8 == 0 or K == 1:
        # Sublane-aligned split: free relabel (K*toh, OW) -> (1, K, toh, OW).
        o_ref[...] = out.reshape(1, K, toh, OW).astype(o_ref.dtype)
    else:
        # Fallback for odd OH with a single full-OH tile.
        for k in range(K):
            o_ref[0, k] = out[k * toh:(k + 1) * toh, :].astype(o_ref.dtype)


def _pick_toh(OH, block_bytes_fn, budget_bytes, n_batch):
    # Candidates: divisors of OH that are multiples of 8, plus full OH
    # (avoids partial last tiles / OOB reads of the folded matrix).
    cands = sorted({d for d in range(8, OH + 1, 8) if OH % d == 0} | {OH})
    fitting = [d for d in cands if block_bytes_fn(d) <= budget_bytes]
    toh = max(fitting) if fitting else min(cands)
    # v7x has 2 TensorCores; keep >=2 grid steps when the batch axis alone
    # would leave the second core idle.  No-op on single-TC v5e/v6e.
    if n_batch == 1 and toh == OH:
        smaller = [d for d in (fitting if fitting else cands) if d < OH]
        if smaller:
            toh = max(smaller)
    return toh


@functools.partial(
    jax.jit,
    static_argnames=("image_height", "image_width", "toh", "out_dtype",
                     "bf16_matmul"))
def seg_decoder_forward(x_nchw, conv_w, conv_b, *, image_height, image_width,
                        toh=None, out_dtype=jnp.float32, bf16_matmul=False):
    """SegDecoder forward (eval mode).

    x_nchw : (N, Cin, H, W) float32
    conv_w : (K, Cin) float32  (PyTorch Conv2d weight with 1x1 kernel squeezed)
    conv_b : (K,)     float32
    returns: (N, K, image_height, image_width) out_dtype (NCHW).
    """
    N, Cin, H, W = x_nchw.shape
    K = conv_w.shape[0]
    OH, OW = image_height, image_width
    CinH = Cin * H

    in_itemsize = 2 if bf16_matmul else 4
    out_itemsize = np.dtype(out_dtype).itemsize

    def block_bytes(t):
        # Double-buffered VMEM estimate for one grid step.
        return (2 * K * t * OW * out_itemsize        # output block
                + 2 * CinH * W * in_itemsize         # x block
                + 2 * K * t * CinH * in_itemsize     # folded A block
                + 2 * W * OW * in_itemsize           # wxt
                + 2 * K * t * 4)                     # bias column

    if toh is None:
        # ~24 MiB budget: fits v7x's 64 MiB VMEM with headroom; v5e/v6e have 128 MiB.
        toh = _pick_toh(OH, block_bytes, 24 * 1024 * 1024, N)
    if OH % toh != 0:
        raise ValueError(f"toh={toh} must divide image_height={OH}")
    n_tiles = OH // toh

    # Interp matrices: static shapes -> baked as constants at trace time.
    wy = jnp.asarray(_bilinear_matrix(OH, H))             # (OH, H)
    wxt = jnp.asarray(_bilinear_matrix(OW, W).T)          # (W, OW)

    # Fold the 1x1 conv into the height-interp matrix:
    #   A[t, k*toh + r, c*H + h] = conv_w[k, c] * Wy[t*toh + r, h]
    a = jnp.einsum('kc,ph->kpch', conv_w, wy)             # (K, OH, Cin, H)
    a = a.reshape(K, n_tiles, toh, CinH)
    a = jnp.transpose(a, (1, 0, 2, 3)).reshape(n_tiles * K * toh, CinH)

    bias_col = jnp.repeat(conv_b, toh)[:, None]           # (K*toh, 1), f32

    x_flat = x_nchw.reshape(N, CinH, W)                   # metadata-only for NCHW

    matmul_dtype = jnp.bfloat16 if bf16_matmul else jnp.float32
    a = a.astype(matmul_dtype)
    wxt = wxt.astype(matmul_dtype)
    x_flat = x_flat.astype(matmul_dtype)

    # Raise scoped VMEM (v5e default is only 16 MiB); stay under v7x physical.
    vmem_limit = int(min(56 * 2**20, max(32 * 2**20, 2 * block_bytes(toh))))

    out = pl.pallas_call(
        _segdecoder_kernel,
        out_shape=jax.ShapeDtypeStruct((N, K, OH, OW), out_dtype),
        grid_spec=pltpu.PrefetchScalarGridSpec(
            num_scalar_prefetch=0,
            grid=(N, n_tiles),
            in_specs=[
                # Folded conv+height-interp rows for the current OH tile.
                pl.BlockSpec((K * toh, CinH), lambda n, t: (t, 0)),
                # Input features: whole (Cin*H, W) block per batch element;
                # block index only depends on n, so it stays resident in VMEM
                # across the OH tiles of that batch element.
                pl.BlockSpec((1, CinH, W), lambda n, t: (n, 0, 0)),
                # Width-interp matrix (constant across the grid).
                pl.BlockSpec((W, OW), lambda n, t: (0, 0)),
                # Bias column (constant across the grid).
                pl.BlockSpec((K * toh, 1), lambda n, t: (0, 0)),
            ],
            out_specs=pl.BlockSpec((1, K, toh, OW), lambda n, t: (n, 0, t, 0)),
        ),
        compiler_params=pltpu.CompilerParams(
            dimension_semantics=("parallel", "parallel"),
            vmem_limit_bytes=vmem_limit),
    )(a, x_flat, wxt, bias_col)

    return out


if __name__ == "__main__":
    # Small config consistent with the module's __init__:
    # SegDecoder(image_height=32, image_width=40, num_class=5,
    #            feat_channels=4, refine_layers=1)
    N, feat_channels, refine_layers = 2, 4, 1
    Cin = feat_channels * refine_layers
    num_class = 5
    H, W = 8, 10                        # input feature spatial size
    image_height, image_width = 32, 40

    key = jax.random.PRNGKey(0)
    kx, kw, kb = jax.random.split(key, 3)

    x = jax.random.normal(kx, (N, Cin, H, W), dtype=jnp.float32)
    # PyTorch conv weight is (num_class, Cin, 1, 1); stored squeezed (K, Cin).
    conv_w = (jax.random.normal(kw, (num_class, Cin), dtype=jnp.float32)
              * (1.0 / np.sqrt(Cin)))
    conv_b = jax.random.normal(kb, (num_class,), dtype=jnp.float32) * 0.01

    # TODO(synk): Dropout2d(0.1) is train-only; implemented as identity (eval mode).

    # Pure-JAX reference (conv -> +bias -> bilinear resize), bias before resize
    # exactly like PyTorch.
    wy_ref = jnp.asarray(_bilinear_matrix(image_height, H))
    wx_ref = jnp.asarray(_bilinear_matrix(image_width, W))
    mid = jnp.einsum('nchw,kc->nkhw', x, conv_w) + conv_b[None, :, None, None]
    tmp = jnp.einsum('ph,nkhw->nkpw', wy_ref, mid)
    ref = jnp.einsum('qw,nkpw->nkpq', wx_ref, tmp)

    # Default path: auto toh -> full OH tile, grid=(N, 1).
    out = seg_decoder_forward(x, conv_w, conv_b,
                              image_height=image_height,
                              image_width=image_width)
    out = jax.block_until_ready(out)
    assert out.shape == (N, num_class, image_height, image_width)
    np.testing.assert_allclose(np.asarray(out), np.asarray(ref),
                               rtol=1e-4, atol=1e-4)

    # Tiled path: toh=16 -> 2 OH tiles, exercises the OH tiling / folded-A blocks.
    out_tiled = jax.block_until_ready(
        seg_decoder_forward(x, conv_w, conv_b,
                            image_height=image_height,
                            image_width=image_width, toh=16))
    np.testing.assert_allclose(np.asarray(out_tiled), np.asarray(ref),
                               rtol=1e-4, atol=1e-4)

    print("KERNEL_OK")
</pallas_src>

<mosaic_0001>
module attributes {stable_mosaic.version = 11 : i64} {
  func.func @_segdecoder_kernel(%arg0: i32, %arg1: i32, %arg2: memref<160x32xf32, #tpu.memory_space<vmem>>, %arg3: memref<1x32x10xf32, #tpu.memory_space<vmem>>, %arg4: memref<10x40xf32, #tpu.memory_space<vmem>>, %arg5: memref<160x1xf32, #tpu.memory_space<vmem>>, %arg6: memref<1x5x32x40xf32, #tpu.memory_space<vmem>>) attributes {dimension_semantics = [#tpu.dimension_semantics<parallel>, #tpu.dimension_semantics<parallel>], iteration_bounds = array<i64: 2, 1>, scalar_prefetch = 0 : i64, scratch_operands = 0 : i64, tpu.core_type = #tpu.core_type<tc>, window_params = [{transform_indices = @transform_0, window_bounds = array<i64: 160, 32>}, {transform_indices = @transform_1, window_bounds = array<i64: 1, 32, 10>}, {pipeline_mode = #tpu.pipeline_mode<synchronous>, transform_indices = @transform_2, window_bounds = array<i64: 10, 40>}, {pipeline_mode = #tpu.pipeline_mode<synchronous>, transform_indices = @transform_3, window_bounds = array<i64: 160, 1>}, {transform_indices = @transform_4, window_bounds = array<i64: 1, 5, 32, 40>}]} {
    %c0 = arith.constant 0 : index
    %c0_0 = arith.constant 0 : index
    %0 = vector.load %arg2[%c0, %c0_0] : memref<160x32xf32, #tpu.memory_space<vmem>>, vector<160x32xf32>
    %c0_1 = arith.constant 0 : index
    %c0_2 = arith.constant 0 : index
    %c0_3 = arith.constant 0 : index
    %1 = vector.load %arg3[%c0_1, %c0_2, %c0_3] : memref<1x32x10xf32, #tpu.memory_space<vmem>>, vector<1x32x10xf32>
    %2 = vector.shape_cast %1 : vector<1x32x10xf32> to vector<32x10xf32>
    %cst = arith.constant dense<0.000000e+00> : vector<160x10xf32>
    %3 = tpu.matmul %0, %2, %cst {dimension_numbers = #tpu.dot_dimension_numbers<[1], [0], [0], [1], [0, 0, 1, 1], [], []>} : vector<160x32xf32>, vector<32x10xf32>, vector<160x10xf32> -> vector<160x10xf32>
    %c0_4 = arith.constant 0 : index
    %c0_5 = arith.constant 0 : index
    %4 = vector.load %arg4[%c0_4, %c0_5] : memref<10x40xf32, #tpu.memory_space<vmem>>, vector<10x40xf32>
    %cst_6 = arith.constant dense<0.000000e+00> : vector<160x40xf32>
    %5 = tpu.matmul %3, %4, %cst_6 {dimension_numbers = #tpu.dot_dimension_numbers<[1], [0], [0], [1], [0, 0, 1, 1], [], []>} : vector<160x10xf32>, vector<10x40xf32>, vector<160x40xf32> -> vector<160x40xf32>
    %c0_7 = arith.constant 0 : index
    %c0_8 = arith.constant 0 : index
    %6 = vector.load %arg5[%c0_7, %c0_8] : memref<160x1xf32, #tpu.memory_space<vmem>>, vector<160x1xf32>
    %7 = vector.broadcast %6 : vector<160x1xf32> to vector<160x40xf32>
    %8 = arith.addf %5, %7 : vector<160x40xf32>
    %9 = vector.shape_cast %8 : vector<160x40xf32> to vector<1x5x32x40xf32>
    %c0_9 = arith.constant 0 : index
    %c0_10 = arith.constant 0 : index
    %c0_11 = arith.constant 0 : index
    %c0_12 = arith.constant 0 : index
    %10 = vector.load %arg6[%c0_9, %c0_10, %c0_11, %c0_12] : memref<1x5x32x40xf32, #tpu.memory_space<vmem>>, vector<1x5x32x40xf32>
    tpu.vector_store %arg6[%c0_9, %c0_10, %c0_11, %c0_12], %9 {strides = array<i32>} : memref<1x5x32x40xf32, #tpu.memory_space<vmem>>, vector<1x5x32x40xf32>,
    return
  }
  func.func @transform_0(%arg0: i32, %arg1: i32) -> (i32, i32) {
    %c0_i32 = arith.constant 0 : i32
    %c0_i32_0 = arith.constant 0 : i32
    return %arg1, %c0_i32 : i32, i32
  }
  func.func @transform_1(%arg0: i32, %arg1: i32) -> (i32, i32, i32) {
    %c0_i32 = arith.constant 0 : i32
    %c0_i32_0 = arith.constant 0 : i32
    %c0_i32_1 = arith.constant 0 : i32
    return %arg0, %c0_i32, %c0_i32_0 : i32, i32, i32
  }
  func.func @transform_2(%arg0: i32, %arg1: i32) -> (i32, i32) {
    %c0_i32 = arith.constant 0 : i32
    %c0_i32_0 = arith.constant 0 : i32
    %c0_i32_1 = arith.constant 0 : i32
    return %c0_i32, %c0_i32_0 : i32, i32
  }
  func.func @transform_3(%arg0: i32, %arg1: i32) -> (i32, i32) {
    %c0_i32 = arith.constant 0 : i32
    %c0_i32_0 = arith.constant 0 : i32
    %c0_i32_1 = arith.constant 0 : i32
    return %c0_i32, %c0_i32_0 : i32, i32
  }
  func.func @transform_4(%arg0: i32, %arg1: i32) -> (i32, i32, i32, i32) {
    %c0_i32 = arith.constant 0 : i32
    %c0_i32_0 = arith.constant 0 : i32
    %c0_i32_1 = arith.constant 0 : i32
    return %arg0, %c0_i32, %arg1, %c0_i32_0 : i32, i32, i32, i32
  }
}

</mosaic_0001>

<bundles_post_ra>
// kernel: seg_decoder_forward.1
= control target key start
LH: loop header
LB: loop body
LE: loop exit
PB: predicated region body
PF: predicated region fallthrough
CT: control target
= control target key end

     0   :  { %9 = vsyncpa [#allocation3], 0  ;;  %s1646_s0 = inlined_call_operand.vmem [shape: f32[160,32], index: 0, kind: input, shape index: {}]   ;;  %s1647_s1 = inlined_call_operand.vmem [shape: f32[2,32,10], index: 1, kind: input, shape index: {}]   ;;  %s1648_s2 = inlined_call_operand.vmem [shape: f32[10,40], index: 2, kind: input, shape index: {}]   ;;  %s1649_s3 = inlined_call_operand.vmem [shape: f32[160,1], index: 3, kind: input, shape index: {}]   ;;  %s1650_s4 = inlined_call_operand.hbm [shape: f32[2,5,32,40], index: 4, kind: output, shape index: {}]  }
   0x1   :  { %11 = vsyncpa [#allocation3 + $0x1], 0  ;;  %s1318_s15 = smov 0   ;;  %s1320_s16 = smov 0  }
   0x2   :  { %s1322_s17 = smov 0   ;;  %s1324_s18 = smov 0  }
   0x3   :  { %s1326_s19 = smov 0   ;;  %s1328_s20 = smov 0  }
   0x4 LB: > { %s960_s21 = sadd.s32 4294967295, %s1286_s20   ;;  %s961_s22 = sadd.s32 4294967294, %s1286_s20   ;;  %s1286_s20 = sphi %s1328_s20, %s17_s20   ;;  %s1282_s19 = sphi %s1326_s19, %s1657_s19   ;;  %s1278_s18 = sphi %s1324_s18, %s1656_s18   ;;  %s1274_s17 = sphi %s1322_s17, %s1655_s17   ;;  %s1270_s16 = sphi %s1320_s16, %s1654_s16   ;;  %s1266_s15 = sphi %s1318_s15, %s1653_s15  }
   0x5   : > { %s29_s23 = sadd.s32 1, %s1282_s19  ;;  %s132_s24 = sadd.s32 1, %s1274_s17 }
   0x6   : > { %p31_p0 = scmp.ge.s32.totalorder %s29_s23, 2  ;;  %p142_p1 = scmp.ne.s32.totalorder %s1274_s17, %s1270_s16 }
   0x7   : > { %p143_p2 = scmp.eq.s32.totalorder %s960_s21, 1  ;;  %p148_p3 = scmp.ne.s32.totalorder %s1270_s16, %s1266_s15 }
   0x8   : > { %s1659_s23 = smov (%p31_p0, %s29_s23), 0  ;;  %p149_p5 = scmp.eq.s32.totalorder %s961_s22, 1 }
   0x9   : > { %p1358_p4 = por %p143_p2, %p142_p1  ;;  %s127_s26 = ssub.s32 %s1282_s19, %s1659_s23 }
   0xa   : > { %p965_p6 = scmp.ge.s32.totalorder %s1286_s20, 1  ;;  %p130_p7 = scmp.eq.s32.totalorder %s127_s26, 0 }
   0xb   : > { %p1365_p8 = por %p149_p5, %p148_p3  ;;  %p190_p9 = scmp.lt.s32.totalorder %s1286_s20, 3 }
   0xc   : > { %s1371_s28 = scalar_select %p130_p7, %s1274_s17, %s132_s24  }
   0xd   : > { %p191_p10 = pnand %p965_p6, %p190_p9 }
   0xe   : > { %p227_p11 = scmp.lt.s32.totalorder (!%p191_p10), %s1278_s18, 1  ;;  %v233_v0 = vld [vmem:[%s1646_s0] sm:$0xff] (!%p191_p10)  ;;  %vm257_vm0 = vcmask (!%p191_p10), 261120   ;;  %vm666_vm1 = vcmask (!%p191_p10), 1041408   ;;  %v484_v8 = vld [vmem:[%s1648_s2 + $0x8] sm:$0x3] (!%p191_p10) }
   0xf   : > { %194 = sbr.rel (%p191_p10) target bundleno = 517 (0x205), region = 36  ;;  %1067 = vmatprep.mubr.msk.f32.mxu0 (!%p191_p10), %vm257_vm0, %v233_v0  ;;  %v483_v7 = vld [vmem:[%s1648_s2] sm:$0xff] (!%p191_p10)  ;;  %vm1288_vm2 = vmmov (!%p191_p10), 1   ;;  %v234_v10 = vld [vmem:[%s1646_s0 + $0x8] sm:$0xff] (!%p191_p10)  ;;  %v235_v11 = vld [vmem:[%s1646_s0 + $0x10] sm:$0xff] (!%p191_p10)  ;;  %v1289_v31 = vmov (!%p191_p10), 0  }
  0x10   : > { %vm1140_vm3 = vmpackc.low (!%p191_p10), %vm666_vm1, %vm1288_vm2  ;;  %v1139_v9 = vpack.c.bf16 (!%p191_p10), %v484_v8, %v483_v7  ;;  %v236_v12 = vld [vmem:[%s1646_s0 + $0x18] sm:$0xff] (!%p191_p10)  ;;  %v237_v13 = vld [vmem:[%s1646_s0 + $0x20] sm:$0xff] (!%p191_p10)  ;;  %1207 = vset.pattern.permute.xlu1 (!%p191_p10), %v1289_v31  ;;  %1206 = vset.pattern.permute.xlu0 (!%p191_p10), %v1289_v31  ;;  %vm605_vm4 = vcmask (!%p191_p10), 80896   ;;  %s218_s12 = sand.u32 (!%p191_p10), 1, %s1270_s16   ;;  %vm835_vm5 = vcmask (!%p191_p10), 326656   ;;  %s1146_s21 = smul.u32 (!%p191_p10), 2560, %s1278_s18 }
  0x11   : > { %v238_v14 = vld [vmem:[%s1646_s0 + $0x28] sm:$0xff] (!%p191_p10)  ;;  %v239_v15 = vld [vmem:[%s1646_s0 + $0x30] sm:$0xff] (!%p191_p10)  ;;  %v240_v16 = vld [vmem:[%s1646_s0 + $0x38] sm:$0xff] (!%p191_p10)  ;;  %s1145_s13 = smul.u32 (!%p191_p10), 160, %s218_s12 }
  0x12   : > { %1141 = vmatprep.subr.msk.bf16.mxu1 (!%p191_p10), %vm1140_vm3, %v1139_v9  ;;  %v241_v17 = vld [vmem:[%s1646_s0 + $0x40] sm:$0xff] (!%p191_p10)  ;;  %v242_v18 = vld [vmem:[%s1646_s0 + $0x48] sm:$0xff] (!%p191_p10)  ;;  %v243_v19 = vld [vmem:[%s1646_s0 + $0x50] sm:$0xff] (!%p191_p10)  ;;  %s1590_s29 = scalar_lea.hbm (!%p191_p10), %s1650_s4, %s1146_s21 }
  0x13   : > { %1144 = vmatpush3.bf16.msk.msra.mxu1 (!%p191_p10), %vm1140_vm3, %v1139_v9  ;;  %v244_v20 = vld [vmem:[%s1646_s0 + $0x58] sm:$0xff] (!%p191_p10)  ;;  %v245_v21 = vld [vmem:[%s1646_s0 + $0x60] sm:$0xff] (!%p191_p10)  ;;  %v246_v22 = vld [vmem:[%s1646_s0 + $0x68] sm:$0xff] (!%p191_p10)  ;;  %s1547_s14 = scalar_lea.vmem (!%p191_p10), [#allocation2], %s1145_s13 }
  0x14   : > { %v247_v23 = vld [vmem:[%s1646_s0 + $0x70] sm:$0xff] (!%p191_p10)  ;;  %v248_v24 = vld [vmem:[%s1646_s0 + $0x78] sm:$0xff] (!%p191_p10)  ;;  %v249_v25 = vld [vmem:[%s1646_s0 + $0x80] sm:$0xff] (!%p191_p10)  ;;  %s872_s22 = sshll.u32 (!%p191_p10), %s1547_s14, 4  ;;  %s1592_s22 = int_to_ptr.vmem [resolvable:$true] %s872_s22 }
  0x15   : > { %v250_v26 = vld [vmem:[%s1646_s0 + $0x88] sm:$0xff] (!%p191_p10)  ;;  %v251_v27 = vld [vmem:[%s1646_s0 + $0x90] sm:$0xff] (!%p191_p10)  ;;  %v252_v28 = vld [vmem:[%s1646_s0 + $0x98] sm:$0xff] (!%p191_p10)  ;;  %s1208_s30 = scalar_lea.vmem (!%p191_p10), %s1592_s22, 2560 }
  0x16   : > { %s228_s5 = scalar_select %p227_p11, %s1278_s18, 1  ;;  %v487_v29 = vld [vmem:[%s1649_s3 + $0x10] sm:$0xff]  ;;  %v485_v30 = vld [vmem:[%s1649_s3] sm:$0xff]  ;;  %v488_v32 = vld [vmem:[%s1649_s3 + $0x18] sm:$0xff] }
  0x17   : > { %517 = vperm.xlu1 %1207, %v487_v29   ;;  %507 = vperm.xlu0 %1206, %v485_v30   ;;  %v486_v33 = vld [vmem:[%s1649_s3 + $0x8] sm:$0xff]  ;;  %v489_v35 = vld [vmem:[%s1649_s3 + $0x20] sm:$0xff]  ;;  %v492_v36 = vld [vmem:[%s1649_s3 + $0x38] sm:$0xff]  ;;  %s1600_s18 = scalar_lea.sflag [#allocation3], %s218_s12  ;;  %p1209_p12 = scmp.ne.s32.totalorder %s1592_s22, %s1208_s30 }
  0x18   : > { %s1012_s6 = sshll.u32 %s228_s5, 5  ;;  %v490_v34 = vld [vmem:[%s1649_s3 + $0x28] sm:$0xff]  ;;  %v491_v37 = vld [vmem:[%s1649_s3 + $0x30] sm:$0xff]  ;;  %v493_v39 = vld [vmem:[%s1649_s3 + $0x40] sm:$0xff]  ;;  %s1290_s5 = smov [#allocation2]  }
  0x19   : > { %s231_s9 = scalar_lea.vmem %s1647_s1, %s1012_s6  ;;  %v494_v38 = vld [vmem:[%s1649_s3 + $0x48] sm:$0xff]  ;;  %v496_v40 = vld [vmem:[%s1649_s3 + $0x58] sm:$0xff]  ;;  %v495_v41 = vld [vmem:[%s1649_s3 + $0x50] sm:$0xff]  ;;  %p1210_p13 = pnand %p1209_p12, %p1358_p4 }
  0x1a   : > { %v253_v1 = vld [vmem:[%s231_s9] sm:$0xff]  ;;  %v254_v2 = vld [vmem:[%s231_s9 + $0x8] sm:$0xff]  ;;  %v255_v3 = vld [vmem:[%s231_s9 + $0x10] sm:$0xff]  ;;  %s1212_s6 = sshll.u32 %s1290_s5, 4  ;;  %s1213_s6 = int_to_ptr.vmem [resolvable:$false] %s1212_s6 }
  0x1b   : > { %v1131_v4 = vpack.c.bf16 %v254_v2, %v253_v1  ;;  %v256_v5 = vld [vmem:[%s231_s9 + $0x18] sm:$0xff]  ;;  %522 = vperm.xlu1 %1207, %v488_v32   ;;  %512 = vperm.xlu0 %1206, %v486_v33   ;;  %v498_v42 = vld [vmem:[%s1649_s3 + $0x68] sm:$0xff]  ;;  %v497_v43 = vld [vmem:[%s1649_s3 + $0x60] sm:$0xff]  ;;  %p1211_p0 = pneg %p1210_p13  ;;  %s1214_s7 = scalar_lea.vmem %s1213_s6, 5120 }
  0x1c   : > { %v1135_v6 = vpack.c.bf16 %v256_v5, %v255_v3  ;;  %v500_v44 = vld [vmem:[%s1649_s3 + $0x78] sm:$0xff]  ;;  %v499_v45 = vld [vmem:[%s1649_s3 + $0x70] sm:$0xff]  ;;  %v502_v46 = vld [vmem:[%s1649_s3 + $0x88] sm:$0xff]  ;;  %p1215_p1 = scmp.lt.s32.totalorder %s1592_s22, %s1213_s6  ;;  %p1216_p2 = scmp.lt.s32.totalorder %s1214_s7, %s1208_s30 }
  0x1d   : > { %1132 = vmatprep.subr.bf16.mxu0 %v1131_v4  ;;  %v501_v47 = vld [vmem:[%s1649_s3 + $0x80] sm:$0xff]  ;;  %v504_v48 = vld [vmem:[%s1649_s3 + $0x98] sm:$0xff]  ;;  %v503_v49 = vld [vmem:[%s1649_s3 + $0x90] sm:$0xff] }
  0x1e   : > { %1134 = vmatpush3.bf16.msra.mxu0 %v1131_v4  ;;  %p1217_p3 = por %p1216_p2, %p1215_p1 }
  0x1f   : > { %1136 = vmatprep.subr.bf16.mxu0 %v1135_v6  ;;  %532 = vperm.xlu1 %1207, %v490_v34  }
  0x20   : > { %527 = vperm.xlu0 %1206, %v489_v35   ;;  %p1218_p5 = pnand %p1217_p3, %p1211_p0 }
  0x22   : > { %1138 = vmatpush3.bf16.msra.mxu0 %v1135_v6 }
  0x23   : > { %542 = vperm.xlu1 %1207, %v492_v36  }
  0x24   : > { %537 = vperm.xlu0 %1206, %v491_v37  }
  0x25   : > { %1068 = vmatmul.mubr.msk.f32.vlgmr.msra.gmra.mrb[0].mxu0 %vm257_vm0, %v234_v10 }
  0x26   : > { %1070 = vmatprep.mubr.msk.f32.mxu0 %vm257_vm0, %v235_v11 }
  0x27   : > { %552 = vperm.xlu1 %1207, %v494_v38  }
  0x28   : > { %547 = vperm.xlu0 %1206, %v493_v39  }
  0x29   : > { %1071 = vmatmul.mubr.msk.f32.gmra.mrb[2].mxu0 %vm257_vm0, %v236_v12 }
  0x2a   : > { %1073 = vmatprep.mubr.msk.f32.mxu0 %vm257_vm0, %v237_v13 }
  0x2b   : > { %562 = vperm.xlu1 %1207, %v496_v40  }
  0x2c   : > { %557 = vperm.xlu0 %1206, %v495_v41  }
  0x2d   : > { %1074 = vmatmul.mubr.msk.f32.gmra.mrb[4].mxu0 %vm257_vm0, %v238_v14 }
  0x2e   : > { %1076 = vmatprep.mubr.msk.f32.mxu0 %vm257_vm0, %v239_v15 }
  0x2f   : > { %572 = vperm.xlu1 %1207, %v498_v42  }
  0x30   : > { %567 = vperm.xlu0 %1206, %v497_v43  }
  0x31   : > { %1077 = vmatmul.mubr.msk.f32.gmra.mrb[6].mxu0 %vm257_vm0, %v240_v16 }
  0x32   : > { %1079 = vmatprep.mubr.msk.f32.mxu0 %vm257_vm0, %v241_v17 }
  0x33   : > { %582 = vperm.xlu1 %1207, %v500_v44  }
  0x34   : > { %577 = vperm.xlu0 %1206, %v499_v45  }
  0x35   : > { %1080 = vmatmul.mubr.msk.f32.gmra.mrb[8].mxu0 %vm257_vm0, %v242_v18 }
  0x36   : > { %1082 = vmatprep.mubr.msk.f32.mxu0 %vm257_vm0, %v243_v19 }
  0x37   : > { %592 = vperm.xlu1 %1207, %v502_v46  }
  0x38   : > { %587 = vperm.xlu0 %1206, %v501_v47  }
  0x39   : > { %1083 = vmatmul.mubr.msk.f32.gmra.mrb[10].mxu0 %vm257_vm0, %v244_v20 }
  0x3a   : > { %1085 = vmatprep.mubr.msk.f32.mxu0 %vm257_vm0, %v245_v21 }
  0x3b   : > { %602 = vperm.xlu1 %1207, %v504_v48  }
  0x3c   : > { %597 = vperm.xlu0 %1206, %v503_v49  }
  0x3d   : > { %1086 = vmatmul.mubr.msk.f32.gmra.mrb[12].mxu0 %vm257_vm0, %v246_v22 }
  0x3e   : > { %1088 = vmatprep.mubr.msk.f32.mxu0 %vm257_vm0, %v247_v23 }
  0x41   : > { %1089 = vmatmul.mubr.msk.f32.gmra.mrb[14].mxu0 %vm257_vm0, %v248_v24 }
  0x42   : > { %1091 = vmatprep.mubr.msk.f32.mxu0 %vm257_vm0, %v249_v25 }
  0x45   : > { %1092 = vmatmul.mubr.msk.f32.gmra.mrb[16].mxu0 %vm257_vm0, %v250_v26 }
  0x46   : > { %1094 = vmatprep.mubr.msk.f32.mxu0 %vm257_vm0, %v251_v27 }
  0x49   : > { %1095 = vmatmul.mubr.msk.f32.gmra.mrb[18].mxu0 %vm257_vm0, %v252_v28 }
  0x96   : > { %v518_v6 = vpop.permute.xlu1 %517  ;;  %v508_v7 = vpop.permute.xlu0 %507 }
  0x9a   : > { %v523_v8 = vpop.permute.xlu1 %522  ;;  %v513_v9 = vpop.permute.xlu0 %512 }
  0x9e   : > { %v533_v10 = vpop.permute.xlu1 %532 }
  0x9f   : > { %v528_v11 = vpop.permute.xlu0 %527 }
  0xa2   : > { %v543_v12 = vpop.permute.xlu1 %542 }
  0xa3   : > { %v538_v14 = vpop.permute.xlu0 %537 }
  0xa6   : > { %v553_v21 = vpop.permute.xlu1 %552 }
  0xa7   : > { %v548_v23 = vpop.permute.xlu0 %547 }
  0xaa   : > { %v563_v28 = vpop.permute.xlu1 %562 }
  0xab   : > { %v558_v30 = vpop.permute.xlu0 %557 }
  0xae   : > { %v573_v37 = vpop.permute.xlu1 %572 }
  0xaf   : > { %v568_v39 = vpop.permute.xlu0 %567 }
  0xb2   : > { %v583_v44 = vpop.permute.xlu1 %582 }
  0xb3   : > { %v578_v46 = vpop.permute.xlu0 %577 }
  0xf8   : > { %v1069_v50 = vpop.f32.mrb[0].mxu0 }
  0xf9   : > { %v384_v51 = vpop.f32.mrb[1].mxu0 }
  0xfa   : > { %1101 = vmatprep.mubr.msk.f32.mxu1 %vm605_vm4, %v384_v51 }
  0xfb   : > { %1102 = vmatmul.mubr.msk.f32.vlgmr.msra.gmra.mrb[0].mxu1 %vm605_vm4, %v1069_v50 }
  0xfc   : > { %v1072_v52 = vpop.f32.mrb[2].mxu0 }
  0xfd   : > { %v394_v53 = vpop.f32.mrb[3].mxu0 }
  0xfe   : > { %1104 = vmatprep.mubr.msk.f32.mxu1 %vm605_vm4, %v394_v53  ;;  %v593_v53 = vpop.permute.xlu1 %592 }
  0xff   : > { %1105 = vmatmul.mubr.msk.f32.gmra.mrb[2].mxu1 %vm605_vm4, %v1072_v52 }
 0x100   : > { %v1075_v54 = vpop.f32.mrb[4].mxu0 }
 0x101   : > { %v404_v55 = vpop.f32.mrb[5].mxu0 }
 0x102   : > { %1107 = vmatprep.mubr.msk.f32.mxu1 %vm605_vm4, %v404_v55  ;;  %v588_v55 = vpop.permute.xlu0 %587 }
 0x103   : > { %1108 = vmatmul.mubr.msk.f32.gmra.mrb[4].mxu1 %vm605_vm4, %v1075_v54 }
 0x104   : > { %v1078_v56 = vpop.f32.mrb[6].mxu0 }
 0x105   : > { %v414_v57 = vpop.f32.mrb[7].mxu0 }
 0x106   : > { %1110 = vmatprep.mubr.msk.f32.mxu1 %vm605_vm4, %v414_v57 }
 0x107   : > { %1111 = vmatmul.mubr.msk.f32.gmra.mrb[6].mxu1 %vm605_vm4, %v1078_v56 }
 0x108   : > { %v1081_v58 = vpop.f32.mrb[8].mxu0 }
 0x109   : > { %v424_v59 = vpop.f32.mrb[9].mxu0 }
 0x10a   : > { %1113 = vmatprep.mubr.msk.f32.mxu1 %vm605_vm4, %v424_v59 }
 0x10b   : > { %1114 = vmatmul.mubr.msk.f32.gmra.mrb[8].mxu1 %vm605_vm4, %v1081_v58 }
 0x10c   : > { %v1084_v60 = vpop.f32.mrb[10].mxu0 }
 0x10d   : > { %v434_v61 = vpop.f32.mrb[11].mxu0 }
 0x10e   : > { %1116 = vmatprep.mubr.msk.f32.mxu1 %vm605_vm4, %v434_v61 }
 0x10f   : > { %1117 = vmatmul.mubr.msk.f32.gmra.mrb[10].mxu1 %vm605_vm4, %v1084_v60  ;;  %v603_v60 = vpop.permute.xlu1 %602 }
 0x110   : > { %v1087_v62 = vpop.f32.mrb[12].mxu0 }
 0x111   : > { %v444_v63 = vpop.f32.mrb[13].mxu0 }
 0x112   : > { %1119 = vmatprep.mubr.msk.f32.mxu1 %vm605_vm4, %v444_v63 }
 0x113   : > { %1120 = vmatmul.mubr.msk.f32.gmra.mrb[12].mxu1 %vm605_vm4, %v1087_v62  ;;  %v598_v62 = vpop.permute.xlu0 %597 }
 0x114   : > { %v1090_v0 = vpop.f32.mrb[14].mxu0 }
 0x115   : > { %v454_v1 = vpop.f32.mrb[15].mxu0 }
 0x116   : > { %1122 = vmatprep.mubr.msk.f32.mxu1 %vm605_vm4, %v454_v1 }
 0x117   : > { %1123 = vmatmul.mubr.msk.f32.gmra.mrb[14].mxu1 %vm605_vm4, %v1090_v0 }
 0x118   : > { %v1093_v2 = vpop.f32.mrb[16].mxu0 }
 0x119   : > { %v464_v3 = vpop.f32.mrb[17].mxu0 }
 0x11a   : > { %1125 = vmatprep.mubr.msk.f32.mxu1 %vm605_vm4, %v464_v3 }
 0x11b   : > { %1126 = vmatmul.mubr.msk.f32.gmra.mrb[16].mxu1 %vm605_vm4, %v1093_v2 }
 0x11c   : > { %v1096_v4 = vpop.f32.mrb[18].mxu0 }
 0x11d   : > { %v474_v5 = vpop.f32.mrb[19].mxu0 }
 0x11e   : > { %1128 = vmatprep.mubr.msk.f32.mxu1 %vm605_vm4, %v474_v5 }
 0x11f   : > { %1129 = vmatmul.mubr.msk.f32.gmra.mrb[18].mxu1 %vm605_vm4, %v1096_v4 }
 0x1ce   : > { %v1103_v13 = vpop.f32.mrb[0].mxu1 }
 0x1cf   : > { %v742_v15 = vadd.f32 %v1103_v13, %v513_v9  ;;  %v736_v16 = vpop.f32.mrb[1].mxu1 }
 0x1d0   : > { %v737_v17 = vadd.f32 %v736_v16, %v508_v7 }
 0x1d1   : > { %837 = vst.msk [vmem:[%s1547_s14 + $0x8] sm:$0xff] %vm835_vm5, %v742_v15 }
 0x1d2   : > { %836 = vst.msk [vmem:[%s1547_s14] sm:$0xff] %vm835_vm5, %v737_v17  ;;  %v1106_v18 = vpop.f32.mrb[2].mxu1 }
 0x1d3   : > { %v752_v19 = vadd.f32 %v1106_v18, %v523_v8  ;;  %v746_v20 = vpop.f32.mrb[3].mxu1 }
 0x1d4   : > { %v747_v22 = vadd.f32 %v746_v20, %v518_v6 }
 0x1d5   : > { %839 = vst.msk [vmem:[%s1547_s14 + $0x18] sm:$0xff] %vm835_vm5, %v752_v19 }
 0x1d6   : > { %838 = vst.msk [vmem:[%s1547_s14 + $0x10] sm:$0xff] %vm835_vm5, %v747_v22  ;;  %v1109_v24 = vpop.f32.mrb[4].mxu1 }
 0x1d7   : > { %v762_v25 = vadd.f32 %v1109_v24, %v533_v10  ;;  %v756_v26 = vpop.f32.mrb[5].mxu1 }
 0x1d8   : > { %v757_v27 = vadd.f32 %v756_v26, %v528_v11 }
 0x1d9   : > { %841 = vst.msk [vmem:[%s1547_s14 + $0x28] sm:$0xff] %vm835_vm5, %v762_v25 }
 0x1da   : > { %840 = vst.msk [vmem:[%s1547_s14 + $0x20] sm:$0xff] %vm835_vm5, %v757_v27  ;;  %v1112_v29 = vpop.f32.mrb[6].mxu1 }
 0x1db   : > { %v772_v31 = vadd.f32 %v1112_v29, %v543_v12  ;;  %v766_v32 = vpop.f32.mrb[7].mxu1 }
 0x1dc   : > { %v767_v33 = vadd.f32 %v766_v32, %v538_v14 }
 0x1dd   : > { %843 = vst.msk [vmem:[%s1547_s14 + $0x38] sm:$0xff] %vm835_vm5, %v772_v31 }
 0x1de   : > { %842 = vst.msk [vmem:[%s1547_s14 + $0x30] sm:$0xff] %vm835_vm5, %v767_v33  ;;  %v1115_v34 = vpop.f32.mrb[8].mxu1 }
 0x1df   : > { %v782_v35 = vadd.f32 %v1115_v34, %v553_v21  ;;  %v776_v36 = vpop.f32.mrb[9].mxu1 }
 0x1e0   : > { %v777_v38 = vadd.f32 %v776_v36, %v548_v23 }
 0x1e1   : > { %845 = vst.msk [vmem:[%s1547_s14 + $0x48] sm:$0xff] %vm835_vm5, %v782_v35 }
 0x1e2   : > { %844 = vst.msk [vmem:[%s1547_s14 + $0x40] sm:$0xff] %vm835_vm5, %v777_v38  ;;  %v1118_v40 = vpop.f32.mrb[10].mxu1 }
 0x1e3   : > { %v792_v41 = vadd.f32 %v1118_v40, %v563_v28  ;;  %v786_v42 = vpop.f32.mrb[11].mxu1 }
 0x1e4   : > { %v787_v43 = vadd.f32 %v786_v42, %v558_v30 }
 0x1e5   : > { %847 = vst.msk [vmem:[%s1547_s14 + $0x58] sm:$0xff] %vm835_vm5, %v792_v41 }
 0x1e6   : > { %846 = vst.msk [vmem:[%s1547_s14 + $0x50] sm:$0xff] %vm835_vm5, %v787_v43  ;;  %v1121_v45 = vpop.f32.mrb[12].mxu1 }
 0x1e7   : > { %v802_v47 = vadd.f32 %v1121_v45, %v573_v37  ;;  %v796_v48 = vpop.f32.mrb[13].mxu1 }
 0x1e8   : > { %v797_v49 = vadd.f32 %v796_v48, %v568_v39 }
 0x1e9   : > { %849 = vst.msk [vmem:[%s1547_s14 + $0x68] sm:$0xff] %vm835_vm5, %v802_v47 }
 0x1ea   : > { %848 = vst.msk [vmem:[%s1547_s14 + $0x60] sm:$0xff] %vm835_vm5, %v797_v49  ;;  %v1124_v50 = vpop.f32.mrb[14].mxu1 }
 0x1eb   : > { %v812_v51 = vadd.f32 %v1124_v50, %v583_v44  ;;  %v806_v52 = vpop.f32.mrb[15].mxu1 }
 0x1ec   : > { %v807_v54 = vadd.f32 %v806_v52, %v578_v46 }
 0x1ed   : > { %851 = vst.msk [vmem:[%s1547_s14 + $0x78] sm:$0xff] %vm835_vm5, %v812_v51 }
 0x1ee   : > { %850 = vst.msk [vmem:[%s1547_s14 + $0x70] sm:$0xff] %vm835_vm5, %v807_v54  ;;  %v1127_v56 = vpop.f32.mrb[16].mxu1 }
 0x1ef   : > { %v822_v57 = vadd.f32 %v1127_v56, %v593_v53  ;;  %v816_v58 = vpop.f32.mrb[17].mxu1 }
 0x1f0   : > { %v817_v59 = vadd.f32 %v816_v58, %v588_v55 }
 0x1f1   : > { %853 = vst.msk [vmem:[%s1547_s14 + $0x88] sm:$0xff] %vm835_vm5, %v822_v57 }
 0x1f2   : > { %852 = vst.msk [vmem:[%s1547_s14 + $0x80] sm:$0xff] %vm835_vm5, %v817_v59  ;;  %v1130_v61 = vpop.f32.mrb[18].mxu1 }
 0x1f3   : > { %v832_v63 = vadd.f32 %v1130_v61, %v603_v60  ;;  %v826_v0 = vpop.f32.mrb[19].mxu1 }
 0x1f4   : > { %v827_v1 = vadd.f32 %v826_v0, %v598_v62 }
 0x1f5   : > { %855 = vst.msk [vmem:[%s1547_s14 + $0x98] sm:$0xff] %vm835_vm5, %v832_v63 }
 0x1f6   : > { %854 = vst.msk [vmem:[%s1547_s14 + $0x90] sm:$0xff] %vm835_vm5, %v827_v1 }
 0x1f7   : > { %1221 = shalt.err (!%p1218_p5)
}
 0x1f8   : > { %s1222_s8 = scalar_lea.hbm %s1590_s29, 2560  ;;  %s1226_s11 = scalar_lea.hbm %s1650_s4, 5120 }
 0x1f9   : > { %p1223_p6 = scmp.ne.s32.totalorder %s1590_s29, %s1222_s8  ;;  %p1227_p10 = scmp.lt.u32.totalorder %s1590_s29, %s1650_s4 }
 0x1fa   : > { %p1228_p11 = scmp.lt.u32.totalorder %s1226_s11, %s1222_s8  ;;  %p1230_p13 = scmp.lt.u32.totalorder %s1222_s8, %s1590_s29 }
 0x1fb   : > { %p1224_p7 = pnand %p1223_p6, %p1358_p4 }
 0x1fc   : > { %p1229_p12 = por %p1228_p11, %p1227_p10 }
 0x1fd   : > { %p1225_p9 = pneg %p1224_p7 }
 0x1fe   : > { %p1231_p0 = por %p1230_p13, %p1229_p12 }
 0x200   : > { %p1232_p1 = pnand %p1231_p0, %p1225_p9 }
 0x202   : > { %1235 = shalt.err (!%p1232_p1)
}
 0x203   : > { %s1291_s14 = smov 128   ;;  %s1292_s21 = smov 8  }
 0x204   : > { %1147 = dma.vmem_to_hbm [thread:$0]  (%p1358_p4), %s1592_s22, 2560, %s1590_s29, %s1600_s18, %s1291_s14, %s1291_s14, %s1292_s21  }
 0x205 PF: > { %p1153_p2 = scmp.ge.s32.totalorder %s1286_s20, 2  ;;  %s887_s24 = sand.u32 1, %s1266_s15  }
 0x206   : > { %s888_s26 = scalar_lea.sflag [#allocation3], %s887_s24 }
 0x207   : > { %p1150_p3 = pnand %p1153_p2, %p1365_p8 }
 0x209   : > { %1261 = dma.done.wait (!%p1150_p3), %s888_s26, 2560  }
 0x20a   : > { %1263 = vsyncadd (!%p1150_p3), %s888_s26, 4294964736  ;;  %s17_s20 = sadd.s32 1, %s1286_s20   ;;  %s1653_s15 = smov %s1270_s16 }
 0x20b   : > { %p14_p5 = scmp.ge.s32.totalorder %s17_s20, 4   ;;  %s1654_s16 = smov %s1274_s17 }
 0x20c   : > { %s1655_s17 = smov %s1371_s28  ;;  %s1656_s18 = smov %s1282_s19 }
 0x20d   : > { %s1657_s19 = smov %s1659_s23  ;;  %16 = sbr.rel (!%p14_p5) target bundleno = 4 (0x4), region = 74 }
 0x214   :  { %893 = vsyncpa [#allocation3], 1 }
 0x215   :  { %895 = vsyncpa [#allocation3 + $0x1], 1 }

</bundles_post_ra>
